<compile_context>
chip_gen: v6e
topology: v6e:2x2x1
jax: 0.10.0
libtpu: 0.0.40
codegen_flags: <defaults>
</compile_context>

<pallas_src>
import functools

import jax
import jax.numpy as jnp
from jax import lax
from jax.experimental import pallas as pl
from jax.experimental.pallas import tpu as pltpu

_LANE = 128
_SUBLANE = 8
_VMEM_BUDGET = 12 * 1024 * 1024  # bytes, per pipelined working set


def _normalize_kernel(x_ref, o_ref, *, axis, p, eps):
    """Normalize the block along `axis` (reduction axis inside the block)."""
    x = x_ref[...].astype(jnp.float32)
    if p == 2.0:
        ss = jnp.sum(x * x, axis=axis, keepdims=True)
        # eps*eps = 1e-24 is still a normal f32; rsqrt runs on the EUP.
        inv = lax.rsqrt(jnp.maximum(ss, eps * eps))
        o_ref[...] = (x * inv).astype(o_ref.dtype)
    else:
        # TODO(synk): non-default p uses |x|**p (exp/log on EUP) — correct but
        # slower / less precise than the p=2 fast path.
        norm = jnp.sum(jnp.abs(x) ** p, axis=axis, keepdims=True) ** (1.0 / p)
        o_ref[...] = (x / jnp.maximum(norm, eps)).astype(o_ref.dtype)


def _round_up(v, m):
    return -(-v // m) * m


def _pick_tiles_spatial(n, c, hw, itemsize):
    """Pick (tb, tile_hw, hw_pad) for the (N, C, HW) channel-norm path."""
    hw_pad = _round_up(hw, _LANE)
    c_rows = max(_round_up(c, _SUBLANE), _SUBLANE)
    # in + out double-buffered in the input dtype plus f32 compute copies
    bytes_per_lane = c_rows * (4 * itemsize + 2 * 4)
    max_tile = max(_LANE, (_VMEM_BUDGET // bytes_per_lane) // _LANE * _LANE)
    target = min(2048, max_tile)
    if hw_pad <= target:
        tile_hw, hw_pad_out = hw_pad, hw_pad
    else:
        # Prefer a tile that divides the padded extent exactly: no ragged
        # tiles, every writeback is an unmasked full-width vst.
        tile_hw = None
        t = target
        while t >= _LANE:
            if hw_pad % t == 0:
                tile_hw, hw_pad_out = t, hw_pad
                break
            t -= _LANE
        if tile_hw is None:
            # Fallback: pad HW up to a multiple of the target tile (zeros
            # cannot leak into valid outputs: the reduction is along C only).
            tile_hw = target
            hw_pad_out = _round_up(hw, target)

    # Fold several batch elements into one block when C*HW is small so each
    # grid step moves enough bytes to hide the per-step overhead.
    bytes_per_batch = c_rows * tile_hw * (4 * itemsize + 2 * 4)
    tb_cap = min(n, 64, max(1, _VMEM_BUDGET // bytes_per_batch))
    tb = 1
    for d in range(tb_cap, 0, -1):
        if n % d == 0:
            tb = d
            break
    return tb, tile_hw, hw_pad_out


def _pick_tile_rows(n, c, itemsize):
    """Pick (tile_n, n_pad) for the (N, C) last-axis-norm path."""
    c_pad = _round_up(c, _LANE)
    bytes_per_row = c_pad * (4 * itemsize + 2 * 4)
    max_rows = max(_SUBLANE, (_VMEM_BUDGET // bytes_per_row) // _SUBLANE * _SUBLANE)
    n_pad = _round_up(n, _SUBLANE)
    target = min(512, max_rows)
    if n_pad <= target:
        return n_pad, n_pad
    t = target
    while t >= _SUBLANE:
        if n_pad % t == 0:
            return t, n_pad
        t -= _SUBLANE
    return target, _round_up(n, target)


def normalize(x, dim=1, p=2.0, eps=1e-12):
    """F.normalize equivalent for inputs normalized along dim=1."""
    assert dim == 1, "this kernel implements the module default dim=1"
    assert x.ndim >= 2
    n, c = int(x.shape[0]), int(x.shape[1])
    hw = 1
    for s in x.shape[2:]:
        hw *= int(s)

    itemsize = jnp.dtype(x.dtype).itemsize
    kern = functools.partial(_normalize_kernel, axis=1, p=float(p), eps=float(eps))
    cparams = pltpu.CompilerParams(
        dimension_semantics=("parallel", "parallel"),
        vmem_limit_bytes=32 * 1024 * 1024,
    )

    if x.ndim == 2 or hw == 1:
        # dim=1 is effectively the last (lane) axis: reduce along lanes and
        # tile rows -> no lane padding of a tiny spatial axis.
        x2 = x.reshape(n, c)
        tile_n, n_pad = _pick_tile_rows(n, c, itemsize)
        if n_pad != n:
            x2 = jnp.pad(x2, ((0, n_pad - n), (0, 0)))
        out2 = pl.pallas_call(
            kern,
            out_shape=jax.ShapeDtypeStruct((n_pad, c), x.dtype),
            grid_spec=pltpu.PrefetchScalarGridSpec(
                num_scalar_prefetch=0,
                grid=(n_pad // tile_n,),
                in_specs=[pl.BlockSpec((tile_n, c), lambda i: (i, 0))],
                out_specs=pl.BlockSpec((tile_n, c), lambda i: (i, 0)),
            ),
            compiler_params=pltpu.CompilerParams(
                dimension_semantics=("parallel",),
                vmem_limit_bytes=32 * 1024 * 1024,
            ),
        )(x2)
        if n_pad != n:
            out2 = out2[:n]
        return out2.reshape(x.shape)

    # Channel-norm over spatial positions: (N, C, HW) blocks of (TB, C, TILE_HW).
    tb, tile_hw, hw_pad = _pick_tiles_spatial(n, c, hw, itemsize)
    x3 = x.reshape(n, c, hw)
    if hw_pad != hw:
        x3 = jnp.pad(x3, ((0, 0), (0, 0), (0, hw_pad - hw)))

    out3 = pl.pallas_call(
        kern,
        out_shape=jax.ShapeDtypeStruct((n, c, hw_pad), x.dtype),
        grid_spec=pltpu.PrefetchScalarGridSpec(
            num_scalar_prefetch=0,
            grid=(n // tb, hw_pad // tile_hw),
            in_specs=[pl.BlockSpec((tb, c, tile_hw), lambda i, j: (i, 0, j))],
            out_specs=pl.BlockSpec((tb, c, tile_hw), lambda i, j: (i, 0, j)),
        ),
        compiler_params=cparams,
    )(x3)

    if hw_pad != hw:
        out3 = out3[:, :, :hw]
    return out3.reshape(x.shape)


if __name__ == "__main__":
    key = jax.random.PRNGKey(0)

    # 4-D (N, C, H, W) case — the module's typical use (channel L2-normalize).
    x = jax.random.normal(key, (2, 4, 16, 16), dtype=jnp.float32)
    out = jax.block_until_ready(normalize(x, dim=1, p=2.0))
    norm = jnp.sqrt(jnp.sum(x * x, axis=1, keepdims=True))
    ref = x / jnp.maximum(norm, 1e-12)
    assert out.shape == x.shape and out.dtype == x.dtype
    assert jnp.max(jnp.abs(out - ref)) < 1e-5

    # 2-D (N, D) case — dim=1 is the feature axis (lane-reduction path).
    key2 = jax.random.PRNGKey(0)
    x2 = jax.random.normal(key2, (8, 32), dtype=jnp.float32)
    out2 = jax.block_until_ready(normalize(x2, dim=1, p=2.0))
    norm2 = jnp.sqrt(jnp.sum(x2 * x2, axis=1, keepdims=True))
    ref2 = x2 / jnp.maximum(norm2, 1e-12)
    assert out2.shape == x2.shape and out2.dtype == x2.dtype
    assert jnp.max(jnp.abs(out2 - ref2)) < 1e-5

    print("KERNEL_OK")
</pallas_src>

<mosaic_0001>
module attributes {stable_mosaic.version = 11 : i64} {
  func.func @_normalize_kernel(%arg0: i32, %arg1: i32, %arg2: memref<2x4x256xf32, #tpu.memory_space<vmem>>, %arg3: memref<2x4x256xf32, #tpu.memory_space<vmem>>) attributes {dimension_semantics = [#tpu.dimension_semantics<parallel>, #tpu.dimension_semantics<parallel>], iteration_bounds = array<i64: 1, 1>, scalar_prefetch = 0 : i64, scratch_operands = 0 : i64, tpu.core_type = #tpu.core_type<tc>, window_params = [{transform_indices = @transform_0, window_bounds = array<i64: 2, 4, 256>}, {transform_indices = @transform_1, window_bounds = array<i64: 2, 4, 256>}]} {
    %c0 = arith.constant 0 : index
    %c0_0 = arith.constant 0 : index
    %c0_1 = arith.constant 0 : index
    %0 = vector.load %arg2[%c0, %c0_0, %c0_1] : memref<2x4x256xf32, #tpu.memory_space<vmem>>, vector<2x4x256xf32>
    %1 = arith.mulf %0, %0 : vector<2x4x256xf32>
    %cst = arith.constant dense<0.000000e+00> : vector<2x256xf32>
    %2 = vector.multi_reduction <add>, %1, %cst [1] : vector<2x4x256xf32> to vector<2x256xf32>
    %3 = vector.shape_cast %2 : vector<2x256xf32> to vector<2x1x256xf32>
    %cst_2 = arith.constant 1.000000e-24 : f32
    %4 = vector.broadcast %cst_2 : f32 to vector<2x1x256xf32>
    %5 = arith.maximumf %3, %4 : vector<2x1x256xf32>
    %6 = math.rsqrt %5 : vector<2x1x256xf32>
    %7 = vector.broadcast %6 : vector<2x1x256xf32> to vector<2x4x256xf32>
    %8 = arith.mulf %0, %7 : vector<2x4x256xf32>
    %c0_3 = arith.constant 0 : index
    %c0_4 = arith.constant 0 : index
    %c0_5 = arith.constant 0 : index
    %9 = vector.load %arg3[%c0_3, %c0_4, %c0_5] : memref<2x4x256xf32, #tpu.memory_space<vmem>>, vector<2x4x256xf32>
    tpu.vector_store %arg3[%c0_3, %c0_4, %c0_5], %8 {strides = array<i32>} : memref<2x4x256xf32, #tpu.memory_space<vmem>>, vector<2x4x256xf32>,
    return
  }
  func.func @transform_0(%arg0: i32, %arg1: i32) -> (i32, i32, i32) {
    %c0_i32 = arith.constant 0 : i32
    %c0_i32_0 = arith.constant 0 : i32
    return %arg0, %c0_i32, %arg1 : i32, i32, i32
  }
  func.func @transform_1(%arg0: i32, %arg1: i32) -> (i32, i32, i32) {
    %c0_i32 = arith.constant 0 : i32
    %c0_i32_0 = arith.constant 0 : i32
    return %arg0, %c0_i32, %arg1 : i32, i32, i32
  }
}

</mosaic_0001>

<bundles_post_ra>
// kernel: tpu_custom_call.1
= control target key start
LH: loop header
LB: loop body
LE: loop exit
PB: predicated region body
PF: predicated region fallthrough
CT: control target
= control target key end

     0   :  { %6 = vsyncpa [#allocation3], 0  ;;  %s181_s0 = inlined_call_operand.hbm [shape: f32[2,4,256], index: 0, kind: input, shape index: {}]   ;;  %s182_s1 = inlined_call_operand.hbm [shape: f32[2,4,256], index: 1, kind: output, shape index: {}]  }
   0x1   :  { %7 = vsyncpa [#allocation4], 0  ;;  %s155_s6 = smov [#allocation2]  }
   0x2   :  { %s13_s7 = sshll.u32 %s155_s6, 4  ;;  %s14_s7 = int_to_ptr.vmem [resolvable:$true] %s13_s7 }
   0x3   :  { %s119_s8 = scalar_lea.vmem %s14_s7, 256  ;;  %p124_p1 = scmp.lt.s32.totalorder %s14_s7, %s14_s7 }
   0x4   :  { %p120_p0 = scmp.ne.s32.totalorder %s14_s7, %s119_s8  ;;  %p125_p2 = scmp.lt.s32.totalorder %s119_s8, %s119_s8 }
   0x6   :  { %p126_p3 = por %p125_p2, %p124_p1 }
   0x8   :  { %p127_p4 = pnand %p126_p3, %p120_p0 }
   0xa   :  { %130 = shalt.err (!%p127_p4)
}
   0xb   :  { %s156_s9 = smov 128   ;;  %s157_s10 = smov 8  }
   0xc   :  { %19 = dma.hbm_to_vmem [thread:$0]  %s181_s0, 256, %s14_s7, [#allocation3], %s156_s9, %s156_s9, %s157_s10  }
   0xd   :  { %151 = dma.done.wait [#allocation3], 256  }
   0xe   :  { %152 = vsyncadd [#allocation3], 4294967040  ;;  %v23_v0 = vld [vmem:[#allocation2] sm:$0xff]  ;;  %vm33_vm0 = vcmask 1043456   ;;  %v24_v1 = vld [vmem:[#allocation2 + $0x8] sm:$0xff]  ;;  %s158_s0 = smov [#allocation5]  }
   0xf   :  { %v25_v2 = vmul.f32 %v23_v0, %v23_v0  ;;  %v26_v3 = vmul.f32 %v24_v1, %v24_v1  ;;  %s87_s13 = sshll.u32 %s158_s0, 4  ;;  %s88_s13 = int_to_ptr.vmem [resolvable:$true] %s87_s13 }
  0x10   :  { %s131_s14 = scalar_lea.vmem %s88_s13, 256  ;;  %p136_p6 = scmp.lt.s32.totalorder %s88_s13, %s88_s13 }
  0x11   :  { %v29_v4 = vcombine.high %v25_v2, %v25_v2  ;;  %v34_v5 = vsel %vm33_vm0, %v25_v2, 0.0  ;;  %v30_v6 = vcombine.high %v26_v3, %v26_v3  ;;  %v48_v7 = vsel %vm33_vm0, %v26_v3, 0.0  ;;  %p132_p5 = scmp.ne.s32.totalorder %s88_s13, %s131_s14  ;;  %p137_p7 = scmp.lt.s32.totalorder %s131_s14, %s131_s14 }
  0x12   :  { %v35_v8 = vrot.slane %v34_v5, 4  ;;  %v49_v9 = vrot.slane %v48_v7, 4 }
  0x13   :  { %v41_v10 = vsel %vm33_vm0, %v29_v4, 0.0  ;;  %v55_v11 = vsel %vm33_vm0, %v30_v6, 0.0  ;;  %p138_p8 = por %p137_p7, %p136_p6 }
  0x14   :  { %v36_v12 = vadd.f32 %v35_v8, %v34_v5  ;;  %v42_v13 = vrot.slane %v41_v10, 4  ;;  %v50_v14 = vadd.f32 %v49_v9, %v48_v7  ;;  %v56_v15 = vrot.slane %v55_v11, 4 }
  0x15   :  { %p139_p9 = pnand %p138_p8, %p132_p5 }
  0x16   :  { %v37_v16 = vrot.slane %v36_v12, 2  ;;  %v43_v17 = vadd.f32 %v42_v13, %v41_v10  ;;  %v51_v18 = vrot.slane %v50_v14, 2  ;;  %v57_v19 = vadd.f32 %v56_v15, %v55_v11 }
  0x18   :  { %v38_v20 = vadd.f32 %v37_v16, %v36_v12  ;;  %v44_v21 = vrot.slane %v43_v17, 2  ;;  %v52_v22 = vadd.f32 %v51_v18, %v50_v14  ;;  %v58_v23 = vrot.slane %v57_v19, 2 }
  0x1a   :  { %v39_v24 = vrot.slane %v38_v20, 1  ;;  %v45_v25 = vadd.f32 %v44_v21, %v43_v17  ;;  %v53_v26 = vrot.slane %v52_v22, 1  ;;  %v59_v27 = vadd.f32 %v58_v23, %v57_v19 }
  0x1c   :  { %v40_v28 = vadd.f32 %v39_v24, %v38_v20  ;;  %v46_v29 = vrot.slane %v45_v25, 1  ;;  %v54_v30 = vadd.f32 %v53_v26, %v52_v22  ;;  %v60_v31 = vrot.slane %v59_v27, 1 }
  0x1e   :  { %v47_v32 = vadd.f32 %v46_v29, %v45_v25  ;;  %v62_v33 = vmax.f32 %v40_v28, 1e-24  ;;  %v61_v34 = vadd.f32 %v60_v31, %v59_v27  ;;  %v64_v35 = vmax.f32 %v54_v30, 1e-24 }
  0x20   :  { %v63_v36 = vmax.f32 %v47_v32, 1e-24  ;;  %103 = vrsqrt.f32 %v62_v33  ;;  %v65_v37 = vmax.f32 %v61_v34, 1e-24 }
  0x21   :  { %105 = vrsqrt.f32 %v64_v35 }
  0x22   :  { %107 = vrsqrt.f32 %v63_v36 }
  0x23   :  { %109 = vrsqrt.f32 %v65_v37 }
  0x2d   :  { %v104_v38 = vpop.eup %103 }
  0x2e   :  { %v106_v39 = vpop.eup %105 }
  0x2f   :  { %v108_v40 = vpop.eup %107 }
  0x30   :  { %v110_v41 = vpop.eup %109  ;;  %v74_v42 = vcombine.low %v104_v38, %v108_v40 }
  0x31   :  { %v75_v43 = vcombine.low %v106_v39, %v110_v41 }
  0x32   :  { %v78_v44 = vmul.f32 %v74_v42, %v23_v0 }
  0x33   :  { %v79_v45 = vmul.f32 %v75_v43, %v24_v1 }
  0x34   :  { %80 = vst [vmem:[#allocation5] sm:$0xff] %v78_v44 }
  0x35   :  { %81 = vst [vmem:[#allocation5 + $0x8] sm:$0xff] %v79_v45 }
  0x36   :  { %142 = shalt.err (!%p139_p9)
}
  0x37   :  { %93 = dma.vmem_to_hbm [thread:$0]  %s88_s13, 256, %s182_s1, [#allocation4], %s156_s9, %s156_s9, %s157_s10  }
  0x38   :  { %153 = dma.done.wait [#allocation4], 256  }
  0x39   :  { %154 = vsyncadd [#allocation4], 4294967040 }
  0x3a   :  { %97 = vsyncpa [#allocation3], 1 }
  0x3b   :  { %98 = vsyncpa [#allocation4], 1 }

</bundles_post_ra>
